<compile_context>
chip_gen: v7x
topology: tpu7x:2x2x1
jax: 0.10.0
libtpu: 0.0.40
codegen_flags: <defaults>
</compile_context>

<pallas_src>
import jax
import jax.numpy as jnp
from jax.experimental import pallas as pl
from jax.experimental.pallas import tpu as pltpu


def _landmark_kernel(x_ref, w_ref, b_ref, o_ref):
    # x_ref: (1, C_in, T)   w_ref: (C_out, C_in)   b_ref: (C_out, 1)   o_ref: (1, C_out, T)
    acc = jnp.dot(w_ref[...], x_ref[0], preferred_element_type=jnp.float32)  # (C_out, T)
    o_ref[0] = (acc + b_ref[...]).astype(o_ref.dtype)


def landmark_head_forward(x_nchw, weight, bias, num_anchors=3, tile_hw=2048):
    """x_nchw: (N, C_in, H, W); weight: (C_out, C_in) 1x1-conv weights; bias: (C_out,).

    Returns (N, H*W*num_anchors, 10), matching LandmarkHead.forward.
    """
    N, C_in, H, W = x_nchw.shape
    C_out = weight.shape[0]
    assert C_out == num_anchors * 10
    HW = H * W

    x3 = x_nchw.reshape(N, C_in, HW)                       # free reshape of contiguous NCHW
    w = weight.astype(x_nchw.dtype)                        # (C_out, C_in)
    b = bias.reshape(C_out, 1).astype(jnp.float32)         # broadcast along lanes, f32 add

    # Lane-dense spatial tiling: last block dim is either the full extent or a multiple of 128.
    tile_hw = min(tile_hw, HW)
    if tile_hw != HW:
        tile_hw = max(128, (tile_hw // 128) * 128)
    grid_hw = pl.cdiv(HW, tile_hw)                         # partial last tile handled by Pallas

    out_nchw = pl.pallas_call(
        _landmark_kernel,
        out_shape=jax.ShapeDtypeStruct((N, C_out, HW), x_nchw.dtype),
        grid_spec=pltpu.PrefetchScalarGridSpec(
            num_scalar_prefetch=0,
            grid=(N, grid_hw),
            in_specs=[
                pl.BlockSpec((1, C_in, tile_hw), lambda n, t: (n, 0, t)),
                pl.BlockSpec((C_out, C_in), lambda n, t: (0, 0)),
                pl.BlockSpec((C_out, 1), lambda n, t: (0, 0)),
            ],
            out_specs=pl.BlockSpec((1, C_out, tile_hw), lambda n, t: (n, 0, t)),
        ),
        compiler_params=pltpu.CompilerParams(
            dimension_semantics=("parallel", "parallel"),
        ),
    )(x3, w, b)

    # PyTorch: conv -> permute(0,2,3,1) -> view(N, -1, 10).  Only the small head output
    # (C_out = 30 channels) goes through this transpose; the big activation never does.
    return jnp.transpose(out_nchw, (0, 2, 1)).reshape(N, HW * num_anchors, 10)


if __name__ == "__main__":
    key = jax.random.PRNGKey(0)
    k_x, k_w, k_b = jax.random.split(key, 3)

    # Small shapes consistent with the module: inchannels=32, num_anchors=3.
    N, C_in, H, W = 2, 32, 16, 16
    num_anchors = 3
    C_out = num_anchors * 10

    x = jax.random.normal(k_x, (N, C_in, H, W), dtype=jnp.float32)
    # Conv2d 1x1 weights collapsed to (C_out, C_in).
    weight = jax.random.normal(k_w, (C_out, C_in), dtype=jnp.float32) * 0.05
    bias = jax.random.normal(k_b, (C_out,), dtype=jnp.float32) * 0.01

    out = landmark_head_forward(x, weight, bias, num_anchors=num_anchors)
    out = jax.block_until_ready(out)

    # Pure-JAX reference (1x1 conv + permute + view).
    ref = jnp.einsum("nchw,oc->nhwo", x, weight) + bias
    ref = ref.reshape(N, H * W * num_anchors, 10)

    assert out.shape == (N, H * W * num_anchors, 10), out.shape
    assert jnp.allclose(out, ref, atol=1e-4, rtol=1e-4)
    print("KERNEL_OK")
</pallas_src>

<mosaic_0001>
module attributes {stable_mosaic.version = 11 : i64} {
  func.func @_landmark_kernel(%arg0: i32, %arg1: i32, %arg2: memref<1x32x256xf32, #tpu.memory_space<vmem>>, %arg3: memref<30x32xf32, #tpu.memory_space<vmem>>, %arg4: memref<30x1xf32, #tpu.memory_space<vmem>>, %arg5: memref<1x30x256xf32, #tpu.memory_space<vmem>>) attributes {dimension_semantics = [#tpu.dimension_semantics<parallel>, #tpu.dimension_semantics<parallel>], iteration_bounds = array<i64: 2, 1>, scalar_prefetch = 0 : i64, scratch_operands = 0 : i64, tpu.core_type = #tpu.core_type<tc>, window_params = [{transform_indices = @transform_0, window_bounds = array<i64: 1, 32, 256>}, {pipeline_mode = #tpu.pipeline_mode<synchronous>, transform_indices = @transform_1, window_bounds = array<i64: 30, 32>}, {pipeline_mode = #tpu.pipeline_mode<synchronous>, transform_indices = @transform_2, window_bounds = array<i64: 30, 1>}, {transform_indices = @transform_3, window_bounds = array<i64: 1, 30, 256>}]} {
    %c0 = arith.constant 0 : index
    %c0_0 = arith.constant 0 : index
    %0 = vector.load %arg3[%c0, %c0_0] : memref<30x32xf32, #tpu.memory_space<vmem>>, vector<30x32xf32>
    %c0_1 = arith.constant 0 : index
    %c0_2 = arith.constant 0 : index
    %c0_3 = arith.constant 0 : index
    %1 = vector.load %arg2[%c0_1, %c0_2, %c0_3] : memref<1x32x256xf32, #tpu.memory_space<vmem>>, vector<1x32x256xf32>
    %2 = vector.shape_cast %1 : vector<1x32x256xf32> to vector<32x256xf32>
    %cst = arith.constant dense<0.000000e+00> : vector<30x256xf32>
    %3 = tpu.matmul %0, %2, %cst {dimension_numbers = #tpu.dot_dimension_numbers<[1], [0], [0], [1], [0, 0, 1, 1], [], []>} : vector<30x32xf32>, vector<32x256xf32>, vector<30x256xf32> -> vector<30x256xf32>
    %c0_4 = arith.constant 0 : index
    %c0_5 = arith.constant 0 : index
    %4 = vector.load %arg4[%c0_4, %c0_5] : memref<30x1xf32, #tpu.memory_space<vmem>>, vector<30x1xf32>
    %5 = vector.broadcast %4 : vector<30x1xf32> to vector<30x256xf32>
    %6 = arith.addf %3, %5 : vector<30x256xf32>
    %c0_6 = arith.constant 0 : index
    %c0_7 = arith.constant 0 : index
    %c0_8 = arith.constant 0 : index
    %7 = vector.load %arg5[%c0_6, %c0_7, %c0_8] : memref<1x30x256xf32, #tpu.memory_space<vmem>>, vector<1x30x256xf32>
    %8 = vector.shape_cast %7 : vector<1x30x256xf32> to vector<30x256xf32>
    %9 = vector.shape_cast %6 : vector<30x256xf32> to vector<1x30x256xf32>
    tpu.vector_store %arg5[%c0_6, %c0_7, %c0_8], %9 {strides = array<i32>} : memref<1x30x256xf32, #tpu.memory_space<vmem>>, vector<1x30x256xf32>,
    return
  }
  func.func @transform_0(%arg0: i32, %arg1: i32) -> (i32, i32, i32) {
    %c0_i32 = arith.constant 0 : i32
    %c0_i32_0 = arith.constant 0 : i32
    return %arg0, %c0_i32, %arg1 : i32, i32, i32
  }
  func.func @transform_1(%arg0: i32, %arg1: i32) -> (i32, i32) {
    %c0_i32 = arith.constant 0 : i32
    %c0_i32_0 = arith.constant 0 : i32
    %c0_i32_1 = arith.constant 0 : i32
    return %c0_i32, %c0_i32_0 : i32, i32
  }
  func.func @transform_2(%arg0: i32, %arg1: i32) -> (i32, i32) {
    %c0_i32 = arith.constant 0 : i32
    %c0_i32_0 = arith.constant 0 : i32
    %c0_i32_1 = arith.constant 0 : i32
    return %c0_i32, %c0_i32_0 : i32, i32
  }
  func.func @transform_3(%arg0: i32, %arg1: i32) -> (i32, i32, i32) {
    %c0_i32 = arith.constant 0 : i32
    %c0_i32_0 = arith.constant 0 : i32
    return %arg0, %c0_i32, %arg1 : i32, i32, i32
  }
}

</mosaic_0001>

<bundles_post_ra>
// kernel: tpu_custom_call.1
= control target key start
LH: loop header
LB: loop body
LE: loop exit
PB: predicated region body
PF: predicated region fallthrough
CT: control target
= control target key end

     0   :  { %8 = vsyncpa [#allocation3], 0  ;;  %s807_s0 = inlined_call_operand.hbm [shape: f32[2,32,256], index: 0, kind: input, shape index: {}]   ;;  %s808_s1 = inlined_call_operand.vmem [shape: f32[30,32], index: 1, kind: input, shape index: {}]   ;;  %s809_s2 = inlined_call_operand.vmem [shape: f32[30,1], index: 2, kind: input, shape index: {}]   ;;  %s810_s3 = inlined_call_operand.vmem [shape: f32[2,30,256], index: 3, kind: output, shape index: {}]  }
   0x1   :  { %10 = vsyncpa [#allocation3 + $0x1], 0  ;;  %s659_s12 = smov 0   ;;  %s661_s13 = smov 0  }
   0x2   :  { %s663_s14 = smov 0   ;;  %s665_s15 = smov 0  }
   0x3   :  { %s667_s16 = smov 0   ;;  %s669_s17 = smov 0  }
   0x4 LB: > { %s460_s18 = sadd.s32 4294967295, %s632_s17   ;;  %s28_s19 = sadd.s32 1, %s628_s16  ;;  %s632_s17 = sphi %s669_s17, %s16_s17   ;;  %s628_s16 = sphi %s667_s16, %s818_s16   ;;  %s624_s15 = sphi %s665_s15, %s817_s15   ;;  %s620_s14 = sphi %s663_s14, %s816_s14   ;;  %s616_s13 = sphi %s661_s13, %s815_s13   ;;  %s612_s12 = sphi %s659_s12, %s814_s12  }
   0x5   : > { %p30_p0 = scmp.ge.s32.totalorder %s28_s19, 2  ;;  %s37_s20 = sadd.s32 1, %s620_s14 }
   0x6   : > { %p44_p1 = scmp.ne.s32.totalorder %s620_s14, %s616_s13  ;;  %p45_p2 = scmp.eq.s32.totalorder %s632_s17, 0 }
   0x7   : > { %s820_s19 = smov (%p30_p0, %s28_s19), 0  ;;  %p50_p4 = scmp.ne.s32.totalorder %s616_s13, %s612_s12 }
   0x8   : > { %p695_p3 = por %p45_p2, %p44_p1  ;;  %s32_s22 = ssub.s32 %s628_s16, %s820_s19 }
   0x9   : > { %p51_p5 = scmp.eq.s32.totalorder %s460_s18, 0  ;;  %p35_p6 = scmp.eq.s32.totalorder %s32_s22, 0 }
   0xa   : > { %p497_p8 = scmp.lt.s32.totalorder %s632_s17, 2  ;;  %s150_s25 = sand.u32 1, %s620_s14  }
   0xb   : > { %p702_p7 = por %p51_p5, %p50_p4  ;;  %s477_s26 = sshll.u32 %s628_s16, 10 }
   0xc   : > { %s708_s24 = scalar_select %p35_p6, %s620_s14, %s37_s20  }
   0xd   : > { %s464_s27 = sshll.u32 %s150_s25, 6  ;;  %s715_s30 = scalar_lea.hbm %s807_s0, %s477_s26 }
   0xe   : > { %s154_s4 = scalar_lea.vmem [#allocation2], %s464_s27  ;;  %p719_p9 = pnand %p497_p8, %p695_p3 }
   0xf   : > { %s163_s5 = sshll.u32 %s154_s4, 4  ;;  %s725_s7 = scalar_lea.sflag [#allocation3], %s150_s25  ;;  %s723_s5 = int_to_ptr.vmem [resolvable:$true] %s163_s5 }
  0x10   : > { %s552_s8 = scalar_lea.hbm %s715_s30, 1024  ;;  %p554_p11 = pneg %p719_p9 }
  0x11   : > { %p553_p10 = scmp.ne.s32.totalorder %s715_s30, %s552_s8  ;;  %s557_s11 = scalar_lea.hbm %s807_s0, 2048 }
  0x12   : > { %p558_p0 = scmp.lt.u32.totalorder %s715_s30, %s807_s0  ;;  %p559_p1 = scmp.lt.u32.totalorder %s557_s11, %s552_s8 }
  0x13   : > { %p555_p12 = pnand %p554_p11, %p553_p10  ;;  %p561_p3 = scmp.lt.u32.totalorder %s552_s8, %s715_s30 }
  0x14   : > { %p560_p2 = por %p559_p1, %p558_p0 }
  0x15   : > { %p556_p13 = pneg %p555_p12 }
  0x16   : > { %p562_p4 = por %p561_p3, %p560_p2 }
  0x18   : > { %p563_p5 = pnand %p562_p4, %p556_p13 }
  0x1a   : > { %566 = shalt.err (!%p563_p5)
}
  0x1b   : > { %s567_s20 = scalar_lea.vmem %s723_s5, 1024  ;;  %s634_s21 = smov [#allocation2]  }
  0x1c   : > { %p568_p6 = scmp.ne.s32.totalorder %s723_s5, %s567_s20  ;;  %s572_s22 = sshll.u32 %s634_s21, 4  ;;  %s573_s22 = int_to_ptr.vmem [resolvable:$false] %s572_s22 }
  0x1d   : > { %s574_s25 = scalar_lea.vmem %s573_s22, 2048  ;;  %p575_p12 = scmp.lt.s32.totalorder %s723_s5, %s573_s22 }
  0x1e   : > { %p570_p8 = pnand %p568_p6, %p554_p11  ;;  %p576_p0 = scmp.lt.s32.totalorder %s574_s25, %s567_s20 }
  0x20   : > { %p571_p10 = pneg %p570_p8  ;;  %p577_p1 = por %p576_p0, %p575_p12 }
  0x22   : > { %p578_p2 = pnand %p577_p1, %p571_p10 }
  0x24   : > { %581 = shalt.err (!%p578_p2)
}
  0x25   : > { %s635_s26 = smov 256   ;;  %s636_s27 = smov 16  }
  0x26   : > { %496 = dma.hbm_to_vmem [thread:$0]  (!%p719_p9), %s715_s30, 1024, %s723_s5, %s725_s7, %s635_s26, %s635_s26, %s636_s27  }
  0x27   : > { %p467_p11 = scmp.ge.s32.totalorder %s632_s17, 1  ;;  %p171_p13 = scmp.lt.s32.totalorder %s632_s17, 3 }
  0x29   : > { %p172_p3 = pnand %p467_p11, %p171_p13 }
  0x2a   : > { %s177_s28 = sand.u32 (!%p172_p3), 1, %s616_s13  }
  0x2b   : > { %175 = sbr.rel (%p172_p3) target bundleno = 282 (0x11a), region = 32  ;;  %s468_s29 = sshll.u32 (!%p172_p3), %s177_s28, 6 }
  0x2c   : > { %s178_s4 = scalar_lea.sflag (!%p172_p3), [#allocation3], %s177_s28  ;;  %s181_s8 = scalar_lea.vmem (!%p172_p3), [#allocation2], %s468_s29 }
  0x32   : > { %607 = dma.done.wait (%p702_p7), %s178_s4, 1024  }
  0x33   : > { %609 = vsyncadd (%p702_p7), %s178_s4, 4294966272  ;;  %v637_v0 = vmov 0.0   ;;  %v638_v1 = vmov 0   ;;  %v224_v2 = vld [vmem:[%s181_s8 + $0x8] sm:$0xff]  ;;  %v226_v3 = vld [vmem:[%s181_s8 + $0x18] sm:$0xff]  ;;  %vm255_vm0 = vcmask 261120  }
  0x34   : > { %332 = vmatprep.mubr.f32.mxu0 %v637_v0  ;;  %344 = vmatprep.mubr.f32.mxu1 %v637_v0  ;;  %v223_v4 = vld [vmem:[%s181_s8] sm:$0xff]  ;;  %v479_v5 = vpack.c.bf16 %v226_v3, %v224_v2  ;;  %v225_v6 = vld [vmem:[%s181_s8 + $0x10] sm:$0xff]  ;;  %v228_v7 = vld [vmem:[%s181_s8 + $0x28] sm:$0xff]  ;;  %p210_p7 = scmp.lt.s32.totalorder %s624_s15, 1 }
  0x35   : > { %551 = vset.pattern.permute.xlu1 %v638_v1  ;;  %550 = vset.pattern.permute.xlu0 %v638_v1  ;;  %v230_v8 = vld [vmem:[%s181_s8 + $0x38] sm:$0xff]  ;;  %v481_v9 = vpack.c.bf16 %v225_v6, %v223_v4  ;;  %v227_v11 = vld [vmem:[%s181_s8 + $0x20] sm:$0xff]  ;;  %v229_v12 = vld [vmem:[%s181_s8 + $0x30] sm:$0xff] }
  0x36   : > { %v483_v10 = vpack.c.bf16 %v230_v8, %v228_v7  ;;  %480 = vmatprep.subr.bf16.mxu0 %v479_v5  ;;  %487 = vmatprep.subr.bf16.mxu1 %v479_v5  ;;  %v485_v13 = vpack.c.bf16 %v229_v12, %v227_v11  ;;  %v233_v14 = vld [vmem:[%s809_s2 + $0x10] sm:$0xff]  ;;  %v231_v15 = vld [vmem:[%s809_s2] sm:$0xff]  ;;  %v234_v16 = vld [vmem:[%s809_s2 + $0x18] sm:$0x3f]  ;;  %s822_s15 = smov (!%p210_p7, %s624_s15), 1 }
  0x37   : > { %482 = vmatpush1.bf16.msra.mxu0 %v481_v9  ;;  %489 = vmatpush1.bf16.msra.mxu1 %v481_v9  ;;  %v232_v17 = vld [vmem:[%s809_s2 + $0x8] sm:$0xff]  ;;  %v219_v18 = vld [vmem:[%s808_s1] sm:$0xff]  ;;  %v221_v19 = vld [vmem:[%s808_s1 + $0x10] sm:$0xff]  ;;  %s478_s28 = sshll.u32 %s822_s15, 6 }
  0x38   : > { %484 = vmatprep.subr.bf16.mxu0 %v483_v10  ;;  %488 = vmatprep.subr.bf16.mxu1 %v483_v10  ;;  %v220_v20 = vld [vmem:[%s808_s1 + $0x8] sm:$0xff]  ;;  %v222_v21 = vld [vmem:[%s808_s1 + $0x18] sm:$0x3f]  ;;  %s217_s8 = scalar_lea.vmem %s810_s3, %s478_s28 }
  0x39   : > { %247 = vperm.xlu1 %551, %v233_v14   ;;  %237 = vperm.xlu0 %550, %v231_v15  }
  0x3b   : > { %486 = vmatpush1.bf16.msra.mxu0 %v485_v13  ;;  %490 = vmatpush1.bf16.msra.mxu1 %v485_v13 }
  0x3d   : > { %252 = vperm.xlu1 %551, %v234_v16   ;;  %242 = vperm.xlu0 %550, %v232_v17  }
  0x3e   : > { %471 = vmatmul.mubr.msk.f32.vlgmr.msra.gmra.mrb[0].mxu0 %vm255_vm0, %v219_v18  ;;  %473 = vmatmul.mubr.msk.f32.vlgmr.msra.gmra.mrb[0].mxu1 %vm255_vm0, %v221_v19 }
  0x3f   : > { %338 = vmatprep.mubr.f32.mxu0 %v637_v0  ;;  %350 = vmatprep.mubr.f32.mxu1 %v637_v0 }
  0x42   : > { %472 = vmatmul.mubr.msk.f32.gmra.mrb[2].mxu0 %vm255_vm0, %v220_v20  ;;  %474 = vmatmul.mubr.msk.f32.gmra.mrb[2].mxu1 %vm255_vm0, %v222_v21 }
  0xb8   : > { %v248_v22 = vpop.permute.xlu1 %247  ;;  %v238_v23 = vpop.permute.xlu0 %237 }
  0xbc   : > { %v253_v32 = vpop.permute.xlu1 %252  ;;  %v243_v33 = vpop.permute.xlu0 %242 }
 0x111   : > { %v334_v24 = vpop.f32.mrb[0].mxu0  ;;  %v346_v25 = vpop.f32.mrb[0].mxu1 }
 0x112   : > { %v335_v26 = vadd.f32 %v334_v24, %v238_v23  ;;  %v347_v27 = vadd.f32 %v346_v25, %v248_v22  ;;  %v336_v28 = vpop.f32.mrb[1].mxu0  ;;  %v348_v29 = vpop.f32.mrb[1].mxu1 }
 0x113   : > { %v337_v30 = vadd.f32 %v336_v28, %v238_v23  ;;  %v349_v31 = vadd.f32 %v348_v29, %v248_v22 }
 0x114   : > { %357 = vst [vmem:[%s217_s8] sm:$0xff] %v335_v26  ;;  %361 = vst [vmem:[%s217_s8 + $0x20] sm:$0xff] %v347_v27 }
 0x115   : > { %358 = vst [vmem:[%s217_s8 + $0x8] sm:$0xff] %v337_v30  ;;  %362 = vst [vmem:[%s217_s8 + $0x28] sm:$0xff] %v349_v31  ;;  %v340_v34 = vpop.f32.mrb[2].mxu0  ;;  %v352_v35 = vpop.f32.mrb[2].mxu1 }
 0x116   : > { %v341_v36 = vadd.f32 %v340_v34, %v243_v33  ;;  %v353_v37 = vadd.f32 %v352_v35, %v253_v32  ;;  %v342_v38 = vpop.f32.mrb[3].mxu0  ;;  %v354_v39 = vpop.f32.mrb[3].mxu1 }
 0x117   : > { %v343_v40 = vadd.f32 %v342_v38, %v243_v33  ;;  %v355_v41 = vadd.f32 %v354_v39, %v253_v32 }
 0x118   : > { %359 = vst [vmem:[%s217_s8 + $0x10] sm:$0xff] %v341_v36  ;;  %363 = vst [vmem:[%s217_s8 + $0x30] sm:$0x3f] %v353_v37 }
 0x119   : > { %360 = vst [vmem:[%s217_s8 + $0x18] sm:$0xff] %v343_v40  ;;  %364 = vst [vmem:[%s217_s8 + $0x38] sm:$0x3f] %v355_v41 }
 0x11a PF: > { %s16_s17 = sadd.s32 1, %s632_s17   ;;  %s814_s12 = smov %s616_s13 }
 0x11b   : > { %p13_p9 = scmp.ge.s32.totalorder %s16_s17, 4   ;;  %s815_s13 = smov %s620_s14 }
 0x11c   : > { %s816_s14 = smov %s708_s24  ;;  %s817_s15 = smov %s628_s16 }
 0x11d   : > { %s818_s16 = smov %s820_s19  ;;  %15 = sbr.rel (!%p13_p9) target bundleno = 4 (0x4), region = 72 }
 0x124   :  { %395 = vsyncpa [#allocation3], 1 }
 0x125   :  { %397 = vsyncpa [#allocation3 + $0x1], 1 }

</bundles_post_ra>
